<compile_context>
chip_gen: v7x
topology: tpu7x:2x2x1
jax: 0.10.0
libtpu: 0.0.40
codegen_flags: <defaults>
</compile_context>

<pallas_src>
import functools

import jax
import jax.numpy as jnp
from jax.experimental import pallas as pl
from jax.experimental.pallas import tpu as pltpu


def _round_up(x, m):
    return ((x + m - 1) // m) * m


def mlp_kernel(x_ref, w1_ref, b1_ref, w2_ref, b2_ref, w3_ref, b3_ref, o_ref):
    # x tile: (TILE_B, D) f32 -> bf16 cast on the VPU (free; kernel is HBM-bound)
    # w1: (D, 64) bf16, w2: (64, 64) bf16 (VMEM-resident across grid steps)
    # b1/b2: (1, 64) f32;  w3_row: (1, 64) f32;  b3: (1, 1) f32
    x = x_ref[...].astype(jnp.bfloat16)

    # Layer 1: MXU bf16 matmul, f32 accumulation; bias + ReLU on the VPU in f32.
    h1 = jnp.dot(x, w1_ref[...], preferred_element_type=jnp.float32) + b1_ref[...]
    h1 = jnp.maximum(h1, 0.0)

    # Layer 2: same pattern (activation recast to bf16 for the MXU).
    h2 = jnp.dot(h1.astype(jnp.bfloat16), w2_ref[...],
                 preferred_element_type=jnp.float32) + b2_ref[...]
    h2 = jnp.maximum(h2, 0.0)

    # Layer 3 (out_features = 1): VPU multiply + XLU lane-reduce instead of a
    # nearly-empty MXU pass.
    o_ref[...] = jnp.sum(h2 * w3_ref[...], axis=-1, keepdims=True) + b3_ref[...]


@functools.partial(jax.jit, static_argnames=("tile_b",))
def mlp_forward(x, params, tile_b=1024):
    """x: [B, input_size] float32; params: dict of transposed weights / biases."""
    B, D = x.shape

    # Batch tile: multiple of 8 (sublane), capped at `tile_b`. Pad the batch
    # (zero rows) only when it is not already a tile multiple; padding rows are
    # computed but their outputs are sliced off at the end.
    tb = min(tile_b, _round_up(max(B, 1), 8))
    b_pad = _round_up(B, tb)
    if b_pad != B:
        x = jnp.pad(x, ((0, b_pad - B), (0, 0)))

    # Tiny weights are pre-cast to bf16 once (one-time cost, then VMEM-resident).
    w1 = params["w1"].astype(jnp.bfloat16)
    w2 = params["w2"].astype(jnp.bfloat16)
    b1 = params["b1"]
    b2 = params["b2"]
    w3_row = params["w3"].T            # (1, 64) f32, used for the VPU reduce
    b3 = params["b3"]                  # (1, 1)  f32

    grid = (b_pad // tb,)
    out = pl.pallas_call(
        mlp_kernel,
        out_shape=jax.ShapeDtypeStruct((b_pad, 1), jnp.float32),
        grid=grid,
        in_specs=[
            pl.BlockSpec((tb, D), lambda i: (i, 0)),      # x: tiled over batch
            pl.BlockSpec((D, 64), lambda i: (0, 0)),      # w1: VMEM-resident
            pl.BlockSpec((1, 64), lambda i: (0, 0)),      # b1
            pl.BlockSpec((64, 64), lambda i: (0, 0)),     # w2
            pl.BlockSpec((1, 64), lambda i: (0, 0)),      # b2
            pl.BlockSpec((1, 64), lambda i: (0, 0)),      # w3 (as a row)
            pl.BlockSpec((1, 1), lambda i: (0, 0)),       # b3
        ],
        out_specs=pl.BlockSpec((tb, 1), lambda i: (i, 0)),
        compiler_params=pltpu.CompilerParams(
            dimension_semantics=("parallel",),
        ),
    )(x, w1, b1, w2, b2, w3_row, b3)

    return out[:B]


def init_params(key, input_size):
    """Deterministic init mimicking PyTorch nn.Linear (uniform +/- 1/sqrt(fan_in)).
    Weights stored as [in, out] (already transposed for x @ W)."""
    def linear(k, fan_in, fan_out):
        kw, kb = jax.random.split(k)
        bound = 1.0 / jnp.sqrt(fan_in)
        w = jax.random.uniform(kw, (fan_in, fan_out), jnp.float32, -bound, bound)
        b = jax.random.uniform(kb, (1, fan_out), jnp.float32, -bound, bound)
        return w, b

    k1, k2, k3 = jax.random.split(key, 3)
    w1, b1 = linear(k1, input_size, 64)
    w2, b2 = linear(k2, 64, 64)
    w3, b3 = linear(k3, 64, 1)
    return {"w1": w1, "b1": b1, "w2": w2, "b2": b2, "w3": w3, "b3": b3}


def mlp_reference(x, params):
    h1 = jnp.maximum(x @ params["w1"] + params["b1"], 0.0)
    h2 = jnp.maximum(h1 @ params["w2"] + params["b2"], 0.0)
    return h2 @ params["w3"] + params["b3"]


if __name__ == "__main__":
    key = jax.random.PRNGKey(0)
    kx, kx2, kp = jax.random.split(key, 3)

    input_size = 32
    params = init_params(kp, input_size)

    # Small primary case (single grid step).
    batch = 8
    x = jax.random.normal(kx, (batch, input_size), jnp.float32)
    out = jax.block_until_ready(mlp_forward(x, params))
    ref = mlp_reference(x, params)
    assert out.shape == (batch, 1), out.shape
    # bf16 matmul operands -> loosened tolerance vs the f32 reference.
    assert jnp.allclose(out, ref, atol=2e-2, rtol=2e-2), "mismatch vs reference (B=8)"

    # Secondary case: non-multiple batch with a small tile to exercise the grid
    # (multiple steps), resident weights, and the padding/slice path.
    batch2 = 200
    x2 = jax.random.normal(kx2, (batch2, input_size), jnp.float32)
    out2 = jax.block_until_ready(mlp_forward(x2, params, tile_b=64))
    ref2 = mlp_reference(x2, params)
    assert out2.shape == (batch2, 1), out2.shape
    assert jnp.allclose(out2, ref2, atol=2e-2, rtol=2e-2), "mismatch vs reference (B=200)"

    print("KERNEL_OK")
</pallas_src>

<mosaic_0001>
module attributes {stable_mosaic.version = 11 : i64} {
  func.func @mlp_kernel(%arg0: i32, %arg1: memref<8x32xf32, #tpu.memory_space<vmem>>, %arg2: memref<32x64xbf16, #tpu.memory_space<vmem>>, %arg3: memref<1x64xf32, #tpu.memory_space<vmem>>, %arg4: memref<64x64xbf16, #tpu.memory_space<vmem>>, %arg5: memref<1x64xf32, #tpu.memory_space<vmem>>, %arg6: memref<1x64xf32, #tpu.memory_space<vmem>>, %arg7: memref<1x1xf32, #tpu.memory_space<vmem>>, %arg8: memref<8x1xf32, #tpu.memory_space<vmem>>) attributes {dimension_semantics = [#tpu.dimension_semantics<parallel>], iteration_bounds = array<i64: 1>, scalar_prefetch = 0 : i64, scratch_operands = 0 : i64, tpu.core_type = #tpu.core_type<tc>, window_params = [{transform_indices = @transform_0, window_bounds = array<i64: 8, 32>}, {pipeline_mode = #tpu.pipeline_mode<synchronous>, transform_indices = @transform_1, window_bounds = array<i64: 32, 64>}, {pipeline_mode = #tpu.pipeline_mode<synchronous>, transform_indices = @transform_2, window_bounds = array<i64: 1, 64>}, {pipeline_mode = #tpu.pipeline_mode<synchronous>, transform_indices = @transform_3, window_bounds = array<i64: 64, 64>}, {pipeline_mode = #tpu.pipeline_mode<synchronous>, transform_indices = @transform_4, window_bounds = array<i64: 1, 64>}, {pipeline_mode = #tpu.pipeline_mode<synchronous>, transform_indices = @transform_5, window_bounds = array<i64: 1, 64>}, {pipeline_mode = #tpu.pipeline_mode<synchronous>, transform_indices = @transform_6, window_bounds = array<i64: 1, 1>}, {transform_indices = @transform_7, window_bounds = array<i64: 8, 1>}]} {
    %c0 = arith.constant 0 : index
    %c0_0 = arith.constant 0 : index
    %0 = vector.load %arg1[%c0, %c0_0] : memref<8x32xf32, #tpu.memory_space<vmem>>, vector<8x32xf32>
    %1 = arith.truncf %0 : vector<8x32xf32> to vector<8x32xbf16>
    %c0_1 = arith.constant 0 : index
    %c0_2 = arith.constant 0 : index
    %2 = vector.load %arg2[%c0_1, %c0_2] : memref<32x64xbf16, #tpu.memory_space<vmem>>, vector<32x64xbf16>
    %cst = arith.constant dense<0.000000e+00> : vector<8x64xf32>
    %3 = tpu.matmul %1, %2, %cst {dimension_numbers = #tpu.dot_dimension_numbers<[1], [0], [0], [1], [0, 0, 1, 1], [], []>} : vector<8x32xbf16>, vector<32x64xbf16>, vector<8x64xf32> -> vector<8x64xf32>
    %c0_3 = arith.constant 0 : index
    %c0_4 = arith.constant 0 : index
    %4 = vector.load %arg3[%c0_3, %c0_4] : memref<1x64xf32, #tpu.memory_space<vmem>>, vector<1x64xf32>
    %5 = vector.broadcast %4 : vector<1x64xf32> to vector<8x64xf32>
    %6 = arith.addf %3, %5 : vector<8x64xf32>
    %cst_5 = arith.constant 0.000000e+00 : f32
    %7 = vector.broadcast %cst_5 : f32 to vector<8x64xf32>
    %8 = arith.maximumf %6, %7 : vector<8x64xf32>
    %9 = arith.truncf %8 : vector<8x64xf32> to vector<8x64xbf16>
    %c0_6 = arith.constant 0 : index
    %c0_7 = arith.constant 0 : index
    %10 = vector.load %arg4[%c0_6, %c0_7] : memref<64x64xbf16, #tpu.memory_space<vmem>>, vector<64x64xbf16>
    %cst_8 = arith.constant dense<0.000000e+00> : vector<8x64xf32>
    %11 = tpu.matmul %9, %10, %cst_8 {dimension_numbers = #tpu.dot_dimension_numbers<[1], [0], [0], [1], [0, 0, 1, 1], [], []>} : vector<8x64xbf16>, vector<64x64xbf16>, vector<8x64xf32> -> vector<8x64xf32>
    %c0_9 = arith.constant 0 : index
    %c0_10 = arith.constant 0 : index
    %12 = vector.load %arg5[%c0_9, %c0_10] : memref<1x64xf32, #tpu.memory_space<vmem>>, vector<1x64xf32>
    %13 = vector.broadcast %12 : vector<1x64xf32> to vector<8x64xf32>
    %14 = arith.addf %11, %13 : vector<8x64xf32>
    %cst_11 = arith.constant 0.000000e+00 : f32
    %15 = vector.broadcast %cst_11 : f32 to vector<8x64xf32>
    %16 = arith.maximumf %14, %15 : vector<8x64xf32>
    %c0_12 = arith.constant 0 : index
    %c0_13 = arith.constant 0 : index
    %17 = vector.load %arg6[%c0_12, %c0_13] : memref<1x64xf32, #tpu.memory_space<vmem>>, vector<1x64xf32>
    %18 = vector.broadcast %17 : vector<1x64xf32> to vector<8x64xf32>
    %19 = arith.mulf %16, %18 : vector<8x64xf32>
    %cst_14 = arith.constant dense<0.000000e+00> : vector<8xf32>
    %20 = vector.multi_reduction <add>, %19, %cst_14 [1] : vector<8x64xf32> to vector<8xf32>
    %21 = vector.shape_cast %20 : vector<8xf32> to vector<8x1xf32>
    %c0_15 = arith.constant 0 : index
    %c0_16 = arith.constant 0 : index
    %22 = vector.load %arg7[%c0_15, %c0_16] : memref<1x1xf32, #tpu.memory_space<vmem>>, vector<1x1xf32>
    %23 = vector.broadcast %22 : vector<1x1xf32> to vector<8x1xf32>
    %24 = arith.addf %21, %23 : vector<8x1xf32>
    %c0_17 = arith.constant 0 : index
    %c0_18 = arith.constant 0 : index
    %25 = vector.load %arg8[%c0_17, %c0_18] : memref<8x1xf32, #tpu.memory_space<vmem>>, vector<8x1xf32>
    tpu.vector_store %arg8[%c0_17, %c0_18], %24 {strides = array<i32>} : memref<8x1xf32, #tpu.memory_space<vmem>>, vector<8x1xf32>,
    return
  }
  func.func @transform_0(%arg0: i32) -> (i32, i32) {
    %c0_i32 = arith.constant 0 : i32
    %c0_i32_0 = arith.constant 0 : i32
    return %arg0, %c0_i32 : i32, i32
  }
  func.func @transform_1(%arg0: i32) -> (i32, i32) {
    %c0_i32 = arith.constant 0 : i32
    %c0_i32_0 = arith.constant 0 : i32
    %c0_i32_1 = arith.constant 0 : i32
    return %c0_i32, %c0_i32_0 : i32, i32
  }
  func.func @transform_2(%arg0: i32) -> (i32, i32) {
    %c0_i32 = arith.constant 0 : i32
    %c0_i32_0 = arith.constant 0 : i32
    %c0_i32_1 = arith.constant 0 : i32
    return %c0_i32, %c0_i32_0 : i32, i32
  }
  func.func @transform_3(%arg0: i32) -> (i32, i32) {
    %c0_i32 = arith.constant 0 : i32
    %c0_i32_0 = arith.constant 0 : i32
    %c0_i32_1 = arith.constant 0 : i32
    return %c0_i32, %c0_i32_0 : i32, i32
  }
  func.func @transform_4(%arg0: i32) -> (i32, i32) {
    %c0_i32 = arith.constant 0 : i32
    %c0_i32_0 = arith.constant 0 : i32
    %c0_i32_1 = arith.constant 0 : i32
    return %c0_i32, %c0_i32_0 : i32, i32
  }
  func.func @transform_5(%arg0: i32) -> (i32, i32) {
    %c0_i32 = arith.constant 0 : i32
    %c0_i32_0 = arith.constant 0 : i32
    %c0_i32_1 = arith.constant 0 : i32
    return %c0_i32, %c0_i32_0 : i32, i32
  }
  func.func @transform_6(%arg0: i32) -> (i32, i32) {
    %c0_i32 = arith.constant 0 : i32
    %c0_i32_0 = arith.constant 0 : i32
    %c0_i32_1 = arith.constant 0 : i32
    return %c0_i32, %c0_i32_0 : i32, i32
  }
  func.func @transform_7(%arg0: i32) -> (i32, i32) {
    %c0_i32 = arith.constant 0 : i32
    %c0_i32_0 = arith.constant 0 : i32
    return %arg0, %c0_i32 : i32, i32
  }
}

</mosaic_0001>

<bundles_post_ra>
// kernel: mlp_forward.1
= control target key start
LH: loop header
LB: loop body
LE: loop exit
PB: predicated region body
PF: predicated region fallthrough
CT: control target
= control target key end

     0   :  { %v257_v0 = vmov 0.0   ;;  %vm258_vm0 = vmmov 0   ;;  %vm54_vm1 = vcmask 261120   ;;  %vm139_vm2 = vcmask 523264   ;;  %s337_s1 = inlined_call_operand.vmem [shape: bf16[32,64], index: 1, kind: input, shape index: {}]   ;;  %s338_s0 = inlined_call_operand.vmem [shape: f32[8,32], index: 0, kind: input, shape index: {}]   ;;  %s339_s3 = inlined_call_operand.vmem [shape: bf16[64,64], index: 3, kind: input, shape index: {}]   ;;  %s340_s2 = inlined_call_operand.vmem [shape: f32[1,64], index: 2, kind: input, shape index: {}]   ;;  %s341_s6 = inlined_call_operand.<no memory space> [shape: f32[1,1], index: 6, kind: input, shape index: {}]   ;;  %s342_s4 = inlined_call_operand.vmem [shape: f32[1,64], index: 4, kind: input, shape index: {}]   ;;  %s343_s5 = inlined_call_operand.vmem [shape: f32[1,64], index: 5, kind: input, shape index: {}]   ;;  %s344_s7 = inlined_call_operand.vmem [shape: f32[8,1], index: 7, kind: output, shape index: {}]  }
   0x1   :  { %229 = vmatprep.subr.bf16.mxu0 %v257_v0  ;;  %v251_v1 = vld [vmem:[%s337_s1] sm:$0xff]   ;;  %233 = vmatprep.mubr.msk.bf16.mxu0 %vm258_vm0, %v257_v0  ;;  %v252_v2 = vld [vmem:[%s337_s1 + $0x8] sm:$0xff]   ;;  %v255_v7 = vld [vmem:[%s339_s3 + $0x10] sm:$0xff]   ;;  %v12_v17 = vstv %s341_s6  ;;  %vm203_vm3 = vcmask 7168  }
   0x2   :  { %237 = vmatprep.subr.bf16.mxu1 %v257_v0  ;;  %245 = vmatprep.mubr.msk.bf16.mxu1 %vm258_vm0, %v257_v0  ;;  %v29_v3 = vld [vmem:[%s338_s0] sm:$0xff]  ;;  %v254_v5 = vld [vmem:[%s339_s3 + $0x8] sm:$0xff]   ;;  %v256_v8 = vld [vmem:[%s339_s3 + $0x18] sm:$0xff]   ;;  %13 = vst [vmem:[#allocation2] sm:$0x1] %v12_v17 }
   0x3   :  { %230 = vmatpush3.bf16.msra.mxu0 %v251_v1  ;;  %v253_v4 = vld [vmem:[%s339_s3] sm:$0xff]   ;;  %v30_v6 = vpack.c.bf16 %v29_v3, %v29_v3 }
   0x4   :  { %231 = vmatprep.subr.bf16.mxu0 %v257_v0  ;;  %238 = vmatpush3.bf16.msra.mxu1 %v253_v4  ;;  %v209_v9 = vld [vmem:[%s340_s2] ss:$0 sm:$0xff] }
   0x5   :  { %239 = vmatprep.subr.bf16.mxu1 %v257_v0  ;;  %v213_v18 = vld [vmem:[%s342_s4] ss:$0 sm:$0xff] }
   0x6   :  { %v219_v23 = vld [vmem:[%s343_s5] ss:$0 sm:$0xff] }
   0x7   :  { %232 = vmatpush3.bf16.msra.mxu0 %v252_v2 }
   0x8   :  { %240 = vmatpush3.bf16.msra.mxu1 %v254_v5 }
   0x9   :  { %241 = vmatprep.subr.bf16.mxu1 %v257_v0  ;;  %v220_v28 = vld [vmem:[#allocation2] ss:$0 sm:$0xff] }
   0xa   :  { %234 = vmatmul.mubr.msk.bf16.vlgmr.msra.gmra.mrb[0].mxu0 %vm54_vm1, %v30_v6 }
   0xc   :  { %242 = vmatpush3.bf16.msra.mxu1 %v255_v7 }
   0xd   :  { %243 = vmatprep.subr.bf16.mxu1 %v257_v0 }
  0x10   :  { %244 = vmatpush3.bf16.msra.mxu1 %v256_v8 }
  0xdd   :  { %v92_v10 = vpop.f32.mrb[0].mxu0 }
  0xde   :  { %v93_v11 = vadd.f32 %v209_v9, %v92_v10  ;;  %v235_v12 = vpop.f32.mrb[1].mxu0 }
  0xdf   :  { %v95_v13 = vpop.f32.mrb[2].mxu0 }
  0xe0   :  { %v98_v14 = vmax.f32 %v93_v11, 0.0  ;;  %v236_v15 = vpop.f32.mrb[3].mxu0 }
  0xe2   :  { %v99_v16 = vpack.c.bf16 %v98_v14, %v98_v14 }
  0xe4   :  { %246 = vmatmul.mubr.msk.bf16.vlgmr.msra.gmra.mrb[0].mxu1 %vm139_vm2, %v99_v16 }
 0x1b7   :  { %v177_v19 = vpop.f32.mrb[0].mxu1 }
 0x1b8   :  { %v178_v20 = vadd.f32 %v213_v18, %v177_v19  ;;  %v247_v21 = vpop.f32.mrb[1].mxu1 }
 0x1b9   :  { %v180_v22 = vpop.f32.mrb[2].mxu1 }
 0x1ba   :  { %v183_v24 = vmax.f32 %v178_v20, 0.0  ;;  %v248_v25 = vpop.f32.mrb[3].mxu1 }
 0x1bc   :  { %v191_v26 = vmul.f32 %v219_v23, %v183_v24 }
 0x1be   :  { %v192_v27 = vsel %vm139_vm2, %v191_v26, 0.0 }
 0x1bf   :  { %193 = vadd.xlane.f32.xlu0 %v192_v27 }
 0x24c   :  { %v194_v29 = vpop.xlane.xlu0 %193 }
 0x24d   :  { %v202_v30 = vadd.f32 %v220_v28, %v194_v29 }
 0x24f   :  { %204 = vst.msk [vmem:[%s344_s7] sm:$0xff] %vm203_vm3, %v202_v30 }

</bundles_post_ra>
